<compile_context>
chip_gen: v5e
topology: v5e:2x2
jax: 0.10.0
libtpu: 0.0.40
codegen_flags: <defaults>
</compile_context>

<pallas_src>
import jax
import jax.numpy as jnp
from jax.experimental import pallas as pl
from jax.experimental.pallas import tpu as pltpu


def _ffn_kernel(x_ref, w1_ref, b1_ref, w2_ref, b2_ref, o_ref):
    # dense1: (TM, d_in) @ (d_in, d_hid), f32 accumulation on the MXU.
    h = jnp.dot(x_ref[...], w1_ref[...], preferred_element_type=jnp.float32)
    # bias + ReLU in f32 on the VPU (b1 is (1, d_hid), broadcasts over rows).
    h = jnp.maximum(h + b1_ref[...], 0.0)
    # dense2: (TM, d_hid) @ (d_hid, d_out), f32 accumulation on the MXU.
    y = jnp.dot(h.astype(w2_ref.dtype), w2_ref[...],
                preferred_element_type=jnp.float32)
    y = y + b2_ref[...]
    o_ref[...] = y.astype(o_ref.dtype)


def _round_up(x, m):
    return (x + m - 1) // m * m


def _choose_tm(n, d_in, d_hid, d_out, itemsize, budget_bytes=24 << 20):
    """Pick a row-tile size that keeps resident weights + double-buffered IO
    tiles + the f32 hidden tile under `budget_bytes` (safe on v5e/v6e/v7x)."""
    fixed = (d_in * d_hid + d_hid * d_out + d_hid + d_out) * itemsize
    per_row = 2 * (d_in + d_out) * itemsize + d_hid * 4  # dbl-buf IO + f32 H
    tm = 8
    for cand in (1024, 512, 256, 128, 64, 32, 16, 8):
        if fixed + cand * per_row <= budget_bytes:
            tm = cand
            break
    # Never exceed the (row-padded) problem size; keep it a multiple of 8.
    return min(tm, _round_up(n, 8))


def position_wise_ffn(x, w1, b1, w2, b2):
    """x: (..., d_in); w1: (d_in, d_hid); b1: (d_hid,); w2: (d_hid, d_out); b2: (d_out,).

    Weights are pre-transposed to (in, out), i.e. w = torch_weight.T.
    """
    orig_shape = x.shape
    d_in = orig_shape[-1]
    d_hid = w1.shape[1]
    d_out = w2.shape[1]
    n = 1
    for s in orig_shape[:-1]:
        n *= s

    x2 = x.reshape(n, d_in)
    b1_2 = b1.reshape(1, d_hid)
    b2_2 = b2.reshape(1, d_out)

    itemsize = jnp.dtype(x.dtype).itemsize
    tm = _choose_tm(n, d_in, d_hid, d_out, itemsize)
    n_pad = _round_up(n, tm)
    if n_pad != n:
        x2 = jnp.pad(x2, ((0, n_pad - n), (0, 0)))

    grid = (n_pad // tm,)

    io_bytes = (n * d_in + d_in * d_hid + d_hid * d_out + d_hid + d_out
                + n * d_out) * itemsize
    cost = pl.CostEstimate(
        flops=2 * n * d_in * d_hid + 2 * n * d_hid * d_out,
        transcendentals=0,
        bytes_accessed=io_bytes,
    )

    out = pl.pallas_call(
        _ffn_kernel,
        out_shape=jax.ShapeDtypeStruct((n_pad, d_out), x.dtype),
        grid_spec=pltpu.PrefetchScalarGridSpec(
            num_scalar_prefetch=0,
            grid=grid,
            in_specs=[
                # Row-tiled activations: auto double-buffered across the grid.
                pl.BlockSpec((tm, d_in), lambda i: (i, 0)),
                # Weights / biases: same block every step -> VMEM-resident.
                pl.BlockSpec((d_in, d_hid), lambda i: (0, 0)),
                pl.BlockSpec((1, d_hid), lambda i: (0, 0)),
                pl.BlockSpec((d_hid, d_out), lambda i: (0, 0)),
                pl.BlockSpec((1, d_out), lambda i: (0, 0)),
            ],
            out_specs=pl.BlockSpec((tm, d_out), lambda i: (i, 0)),
        ),
        compiler_params=pltpu.CompilerParams(
            # Independent row tiles -> shard across v7x's 2 TCs; no-op on v5e/v6e.
            dimension_semantics=("parallel",),
            vmem_limit_bytes=48 << 20,
        ),
        cost_estimate=cost,
    )(x2, w1, b1_2, w2, b2_2)

    if n_pad != n:
        out = out[:n]
    return out.reshape(*orig_shape[:-1], d_out)


if __name__ == "__main__":
    # Shapes implied by the module: X is (batch, seq, ffn_num_input)
    batch, seq = 2, 8
    ffn_num_input, ffn_num_hiddens, ffn_num_outputs = 16, 32, 16

    key = jax.random.PRNGKey(0)
    kx, kw1, kb1, kw2, kb2 = jax.random.split(key, 5)

    x = jax.random.normal(kx, (batch, seq, ffn_num_input), dtype=jnp.float32)

    # Deterministic parameter init (mimic nn.Linear uniform(-1/sqrt(fan_in), +)).
    lim1 = 1.0 / (ffn_num_input ** 0.5)
    lim2 = 1.0 / (ffn_num_hiddens ** 0.5)
    # PyTorch stores W as (out, in); we pre-transpose to (in, out) for the kernel.
    w1 = jax.random.uniform(kw1, (ffn_num_input, ffn_num_hiddens),
                            minval=-lim1, maxval=lim1, dtype=jnp.float32)
    b1 = jax.random.uniform(kb1, (ffn_num_hiddens,),
                            minval=-lim1, maxval=lim1, dtype=jnp.float32)
    w2 = jax.random.uniform(kw2, (ffn_num_hiddens, ffn_num_outputs),
                            minval=-lim2, maxval=lim2, dtype=jnp.float32)
    b2 = jax.random.uniform(kb2, (ffn_num_outputs,),
                            minval=-lim2, maxval=lim2, dtype=jnp.float32)

    y = position_wise_ffn(x, w1, b1, w2, b2)
    y = jax.block_until_ready(y)

    # Pure-JAX reference check of the forward semantics.
    ref = jnp.maximum(x @ w1 + b1, 0.0) @ w2 + b2
    assert y.shape == (batch, seq, ffn_num_outputs)
    assert jnp.allclose(y, ref, atol=1e-5, rtol=1e-5)

    print("KERNEL_OK")
</pallas_src>

<mosaic_0001>
module attributes {stable_mosaic.version = 11 : i64} {
  func.func @_ffn_kernel(%arg0: i32, %arg1: memref<16x16xf32, #tpu.memory_space<vmem>>, %arg2: memref<16x32xf32, #tpu.memory_space<vmem>>, %arg3: memref<1x32xf32, #tpu.memory_space<vmem>>, %arg4: memref<32x16xf32, #tpu.memory_space<vmem>>, %arg5: memref<1x16xf32, #tpu.memory_space<vmem>>, %arg6: memref<16x16xf32, #tpu.memory_space<vmem>>) attributes {dimension_semantics = [#tpu.dimension_semantics<parallel>], iteration_bounds = array<i64: 1>, scalar_prefetch = 0 : i64, scratch_operands = 0 : i64, tpu.core_type = #tpu.core_type<tc>, window_params = [{transform_indices = @transform_0, window_bounds = array<i64: 16, 16>}, {pipeline_mode = #tpu.pipeline_mode<synchronous>, transform_indices = @transform_1, window_bounds = array<i64: 16, 32>}, {pipeline_mode = #tpu.pipeline_mode<synchronous>, transform_indices = @transform_2, window_bounds = array<i64: 1, 32>}, {pipeline_mode = #tpu.pipeline_mode<synchronous>, transform_indices = @transform_3, window_bounds = array<i64: 32, 16>}, {pipeline_mode = #tpu.pipeline_mode<synchronous>, transform_indices = @transform_4, window_bounds = array<i64: 1, 16>}, {transform_indices = @transform_5, window_bounds = array<i64: 16, 16>}]} {
    %c0 = arith.constant 0 : index
    %c0_0 = arith.constant 0 : index
    %0 = vector.load %arg1[%c0, %c0_0] : memref<16x16xf32, #tpu.memory_space<vmem>>, vector<16x16xf32>
    %c0_1 = arith.constant 0 : index
    %c0_2 = arith.constant 0 : index
    %1 = vector.load %arg2[%c0_1, %c0_2] : memref<16x32xf32, #tpu.memory_space<vmem>>, vector<16x32xf32>
    %cst = arith.constant dense<0.000000e+00> : vector<16x32xf32>
    %2 = tpu.matmul %0, %1, %cst {dimension_numbers = #tpu.dot_dimension_numbers<[1], [0], [0], [1], [0, 0, 1, 1], [], []>} : vector<16x16xf32>, vector<16x32xf32>, vector<16x32xf32> -> vector<16x32xf32>
    %c0_3 = arith.constant 0 : index
    %c0_4 = arith.constant 0 : index
    %3 = vector.load %arg3[%c0_3, %c0_4] : memref<1x32xf32, #tpu.memory_space<vmem>>, vector<1x32xf32>
    %4 = vector.broadcast %3 : vector<1x32xf32> to vector<16x32xf32>
    %5 = arith.addf %2, %4 : vector<16x32xf32>
    %cst_5 = arith.constant 0.000000e+00 : f32
    %6 = vector.broadcast %cst_5 : f32 to vector<16x32xf32>
    %7 = arith.maximumf %5, %6 : vector<16x32xf32>
    %c0_6 = arith.constant 0 : index
    %c0_7 = arith.constant 0 : index
    %8 = vector.load %arg4[%c0_6, %c0_7] : memref<32x16xf32, #tpu.memory_space<vmem>>, vector<32x16xf32>
    %cst_8 = arith.constant dense<0.000000e+00> : vector<16x16xf32>
    %9 = tpu.matmul %7, %8, %cst_8 {dimension_numbers = #tpu.dot_dimension_numbers<[1], [0], [0], [1], [0, 0, 1, 1], [], []>} : vector<16x32xf32>, vector<32x16xf32>, vector<16x16xf32> -> vector<16x16xf32>
    %c0_9 = arith.constant 0 : index
    %c0_10 = arith.constant 0 : index
    %10 = vector.load %arg5[%c0_9, %c0_10] : memref<1x16xf32, #tpu.memory_space<vmem>>, vector<1x16xf32>
    %11 = vector.broadcast %10 : vector<1x16xf32> to vector<16x16xf32>
    %12 = arith.addf %9, %11 : vector<16x16xf32>
    %c0_11 = arith.constant 0 : index
    %c0_12 = arith.constant 0 : index
    %13 = vector.load %arg6[%c0_11, %c0_12] : memref<16x16xf32, #tpu.memory_space<vmem>>, vector<16x16xf32>
    tpu.vector_store %arg6[%c0_11, %c0_12], %12 {strides = array<i32>} : memref<16x16xf32, #tpu.memory_space<vmem>>, vector<16x16xf32>,
    return
  }
  func.func @transform_0(%arg0: i32) -> (i32, i32) {
    %c0_i32 = arith.constant 0 : i32
    %c0_i32_0 = arith.constant 0 : i32
    return %arg0, %c0_i32 : i32, i32
  }
  func.func @transform_1(%arg0: i32) -> (i32, i32) {
    %c0_i32 = arith.constant 0 : i32
    %c0_i32_0 = arith.constant 0 : i32
    %c0_i32_1 = arith.constant 0 : i32
    return %c0_i32, %c0_i32_0 : i32, i32
  }
  func.func @transform_2(%arg0: i32) -> (i32, i32) {
    %c0_i32 = arith.constant 0 : i32
    %c0_i32_0 = arith.constant 0 : i32
    %c0_i32_1 = arith.constant 0 : i32
    return %c0_i32, %c0_i32_0 : i32, i32
  }
  func.func @transform_3(%arg0: i32) -> (i32, i32) {
    %c0_i32 = arith.constant 0 : i32
    %c0_i32_0 = arith.constant 0 : i32
    %c0_i32_1 = arith.constant 0 : i32
    return %c0_i32, %c0_i32_0 : i32, i32
  }
  func.func @transform_4(%arg0: i32) -> (i32, i32) {
    %c0_i32 = arith.constant 0 : i32
    %c0_i32_0 = arith.constant 0 : i32
    %c0_i32_1 = arith.constant 0 : i32
    return %c0_i32, %c0_i32_0 : i32, i32
  }
  func.func @transform_5(%arg0: i32) -> (i32, i32) {
    %c0_i32 = arith.constant 0 : i32
    %c0_i32_0 = arith.constant 0 : i32
    return %arg0, %c0_i32 : i32, i32
  }
}

</mosaic_0001>

<bundles_post_ra>
// kernel: tpu_custom_call.1
= control target key start
LH: loop header
LB: loop body
LE: loop exit
PB: predicated region body
PF: predicated region fallthrough
CT: control target
= control target key end

     0   :  { %vm29_vm0 = vcmask 130048   ;;  %s230_s0 = inlined_call_operand.vmem [shape: f32[16,16], index: 0, kind: input, shape index: {}]   ;;  %s231_s1 = inlined_call_operand.vmem [shape: f32[16,32], index: 1, kind: input, shape index: {}]   ;;  %s232_s2 = inlined_call_operand.vmem [shape: f32[1,32], index: 2, kind: input, shape index: {}]   ;;  %s233_s3 = inlined_call_operand.vmem [shape: f32[32,16], index: 3, kind: input, shape index: {}]   ;;  %s234_s4 = inlined_call_operand.vmem [shape: f32[1,16], index: 4, kind: input, shape index: {}]   ;;  %s235_s5 = inlined_call_operand.hbm [shape: f32[16,16], index: 5, kind: output, shape index: {}]  }
   0x1   :  { %v24_v0 = vld [vmem:[%s231_s1 + $0x8] sm:$0xff]  ;;  %v23_v1 = vld [vmem:[%s231_s1] sm:$0xff]  ;;  %v64_v4 = vld [vmem:[%s233_s3 + $0x18] sm:$0xff] }
   0x2   :  { %v22_v2 = vld [vmem:[%s230_s0 + $0x8] sm:$0xff]  ;;  %123 = vmatpush.msra.mxu3 %v24_v0  ;;  %50 = vmatpush.msra.mxu0 %v24_v0  ;;  %v21_v3 = vld [vmem:[%s230_s0] sm:$0xff] }
   0x3   :  { %125 = vmatpush.msra.mxu2 %v64_v4  ;;  %88 = vmatpush.msra.mxu1 %v64_v4 }
   0x4   :  { %10 = vsyncpa [#allocation3], 0  ;;  %124 = vmatpush.msra.mxu3 %v23_v1  ;;  %51 = vmatpush.msra.mxu0 %v23_v1  ;;  %v63_v5 = vld [vmem:[%s233_s3 + $0x10] sm:$0xff]  ;;  %v62_v6 = vld [vmem:[%s233_s3 + $0x8] sm:$0xff]  ;;  %vm69_vm1 = vcmask 261120   ;;  %s107_s13 = sshll.u32 %s235_s5, 4  ;;  %s108_s13 = int_to_ptr.hbm [resolvable:$true] %s107_s13 }
   0x5   :  { %120 = vmatmul.msk.f32.vlgmr.msra.gmra.mxu3 %vm29_vm0, %v22_v2  ;;  %119 = vmatmul.msk.f32.vlgmr.msra.gmra.mxu0 %vm29_vm0, %v21_v3  ;;  %v61_v7 = vld [vmem:[%s233_s3] sm:$0xff]  ;;  %s160_s3 = smov [#allocation2]   ;;  %s161_s14 = smov 128  }
   0x6   :  { %126 = vmatpush.msra.mxu2 %v63_v5  ;;  %89 = vmatpush.msra.mxu1 %v63_v5  ;;  %v132_v8 = vld [vmem:[%s232_s2] ss:$0 sm:$0xff]  ;;  %s105_s11 = sshll.u32 %s160_s3, 4  ;;  %s162_s15 = smov 8   ;;  %s106_s11 = int_to_ptr.vmem [resolvable:$true] %s105_s11 }
   0x7   :  { %v133_v15 = vld [vmem:[%s234_s4] ss:$0 sm:$0xff] }
   0x8   :  { %127 = vmatpush.msra.mxu2 %v62_v6  ;;  %90 = vmatpush.msra.mxu1 %v62_v6 }
   0xa   :  { %128 = vmatpush.msra.mxu2 %v61_v7  ;;  %91 = vmatpush.msra.mxu1 %v61_v7 }
  0x82   :  { %v53_v9 = vpop.f32.mrf.mxu0 }
  0x83   :  { %v54_v10 = vadd.f32 %v132_v8, %v53_v9 }
  0x85   :  { %v59_v11 = vmax.f32 %v54_v10, 0.0 }
  0x87   :  { %121 = vmatmul.msk.f32.vlgmr.msra.gmra.mxu1 %vm69_vm1, %v59_v11 }
  0x88   :  { %v56_v12 = vpop.f32.mrf.mxu3 }
  0x89   :  { %v57_v13 = vadd.f32 %v132_v8, %v56_v12 }
  0x8b   :  { %v60_v14 = vmax.f32 %v57_v13, 0.0 }
  0x8d   :  { %122 = vmatmul.msk.f32.vlgmr.msra.gmra.mxu2 %vm69_vm1, %v60_v14 }
 0x104   :  { %v93_v16 = vpop.f32.mrf.mxu1 }
 0x105   :  { %v94_v17 = vadd.f32 %v133_v15, %v93_v16 }
 0x107   :  { %99 = vst.msk [vmem:[#allocation2] sm:$0xff] %vm29_vm0, %v94_v17 }
 0x110   :  { %v96_v18 = vpop.f32.mrf.mxu2 }
 0x111   :  { %v97_v19 = vadd.f32 %v133_v15, %v96_v18 }
 0x113   :  { %100 = vst.msk [vmem:[#allocation2 + $0x8] sm:$0xff] %vm29_vm0, %v97_v19 }
 0x114   :  { %113 = dma.vmem_to_hbm [thread:$0]  %s106_s11, 256, %s108_s13, [#allocation3], %s161_s14, %s161_s14, %s162_s15  }
 0x115   :  { %158 = dma.done.wait [#allocation3], 256  }
 0x116   :  { %159 = vsyncadd [#allocation3], 4294967040 }
 0x117   :  { %118 = vsyncpa [#allocation3], 1 }

</bundles_post_ra>
